<compile_context>
chip_gen: v6e
topology: v6e:2x2x1
jax: 0.10.0
libtpu: 0.0.40
codegen_flags: <defaults>
</compile_context>

<pallas_src>
import jax
import jax.numpy as jnp
from jax.experimental import pallas as pl
from jax.experimental.pallas import tpu as pltpu

INPUT_DIM = 10
HIDDEN_DIM = 96
BN_EPS = 1e-5


def _round_up(n, m):
    return ((n + m - 1) // m) * m


def _mlp_kernel(xT_ref, w1t_ref, b1_ref, w2t_ref, b2_ref, w3t_ref, b3_ref, o_ref):
    """Fused Linear->ReLU->Linear->ReLU->Linear on one (D, TB) batch tile.

    Batch-on-lanes layout: the batch dimension lives on the 128-lane axis.

    xT_ref : (D, TB)   f32   (streamed per grid step, lane-dense DMA)
    w1t_ref: (H, D)    f32   (resident; f32 for layer-1 precision)
    b1_ref : (H, 1)    f32
    w2t_ref: (H2, H)   bf16  (BN1 affine pre-folded)
    b2_ref : (H2, 1)   f32
    w3t_ref: (1, H2)   bf16  (BN2 affine pre-folded)
    b3_ref : (1,)      f32   (SMEM scalar)
    o_ref  : (1, TB)   f32   (lane-dense output row)
    """
    xT = xT_ref[...]                                             # (D, TB) f32

    # Layer 1: Linear(10, 96) -> ReLU  (Dropout = identity in eval mode).
    # f32 operands, f32 accumulation (K=10 -> negligible MXU cost).
    h = jnp.dot(w1t_ref[...], xT,
                preferred_element_type=jnp.float32) + b1_ref[...]
    h = jnp.maximum(h, 0.0)                                      # (H, TB)

    # Layer 2: Linear(96, 48) -> ReLU  (BN1 affine folded into w2/b2).
    h = jnp.dot(w2t_ref[...], h.astype(jnp.bfloat16),
                preferred_element_type=jnp.float32) + b2_ref[...]
    h = jnp.maximum(h, 0.0)                                      # (H2, TB)

    # Layer 3: Linear(48, 1)  (BN2 affine folded into w3/b3).
    y = jnp.dot(w3t_ref[...], h.astype(jnp.bfloat16),
                preferred_element_type=jnp.float32)              # (1, TB)
    o_ref[...] = y + b3_ref[0]


def init_params(key, input_dim=INPUT_DIM, hidden_dim=HIDDEN_DIM):
    """Deterministic parameter init (PyTorch-style uniform fan-in bounds)."""
    h2 = hidden_dim // 2
    keys = jax.random.split(key, 6)

    def linear(kw, kb, fan_in, fan_out):
        bound = 1.0 / jnp.sqrt(jnp.float32(fan_in))
        w = jax.random.uniform(kw, (fan_in, fan_out), jnp.float32, -bound, bound)
        b = jax.random.uniform(kb, (1, fan_out), jnp.float32, -bound, bound)
        return w, b

    w1, b1 = linear(keys[0], keys[1], input_dim, hidden_dim)
    w2, b2 = linear(keys[2], keys[3], hidden_dim, h2)
    w3, b3 = linear(keys[4], keys[5], h2, 1)

    # BatchNorm1d params at init: gamma=1, beta=0, running_mean=0, running_var=1.
    bn1 = dict(gamma=jnp.ones((1, hidden_dim), jnp.float32),
               beta=jnp.zeros((1, hidden_dim), jnp.float32),
               mean=jnp.zeros((1, hidden_dim), jnp.float32),
               var=jnp.ones((1, hidden_dim), jnp.float32))
    bn2 = dict(gamma=jnp.ones((1, h2), jnp.float32),
               beta=jnp.zeros((1, h2), jnp.float32),
               mean=jnp.zeros((1, h2), jnp.float32),
               var=jnp.ones((1, h2), jnp.float32))

    return dict(w1=w1, b1=b1, bn1=bn1, w2=w2, b2=b2, bn2=bn2, w3=w3, b3=b3)


def _fold_bn(bn):
    """Fold eval-mode BatchNorm into per-feature scale & shift."""
    scale = bn["gamma"] / jnp.sqrt(bn["var"] + BN_EPS)
    shift = bn["beta"] - bn["mean"] * scale
    return scale, shift


def _fold_params(params):
    """Fold BN affines into downstream Linear weights; transpose for the
    batch-on-lanes layout (features on sublanes, batch on lanes)."""
    s1, t1 = _fold_bn(params["bn1"])
    s2, t2 = _fold_bn(params["bn2"])

    w1t = params["w1"].T                                   # (H, D)  f32
    b1 = params["b1"].T                                    # (H, 1)  f32
    w2f = s1.reshape(-1, 1) * params["w2"]                 # (H, H2) rows scaled
    w2t = w2f.T.astype(jnp.bfloat16)                       # (H2, H) bf16
    b2 = (params["b2"] + t1 @ params["w2"]).T              # (H2, 1) f32
    w3f = s2.reshape(-1, 1) * params["w3"]                 # (H2, 1)
    w3t = w3f.T.astype(jnp.bfloat16)                       # (1, H2) bf16
    b3 = (params["b3"] + t2 @ params["w3"]).reshape(1)     # (1,)    f32 (SMEM)

    return w1t, b1, w2t, b2, w3t, b3


def street_light_carbon_forward(params, x, block_batch=4096):
    """x: (B, input_dim) float32 -> (B, 1) float32 (eval-mode forward)."""
    assert block_batch % 128 == 0
    w1t, b1, w2t, b2, w3t, b3 = _fold_params(params)

    B, D = x.shape
    H = w1t.shape[0]
    H2 = w2t.shape[0]

    # Batch tile (lane axis): multiple of 128; keep >= 2 tiles when B > 128 so
    # dimension_semantics=("parallel",) can shard tiles across v7x's 2 TCs.
    if B <= 128:
        TB = 128
    else:
        TB = min(block_batch, _round_up(pl.cdiv(B, 2), 128))
    B_pad = _round_up(B, TB)
    num_tiles = B_pad // TB

    # Batch-on-lanes: x^T is (D, B_pad); each (D, TB) tile DMAs fully dense.
    xT = x.T
    if B_pad != B:
        xT = jnp.pad(xT, ((0, 0), (0, B_pad - B)))

    grid_spec = pltpu.PrefetchScalarGridSpec(
        num_scalar_prefetch=0,
        grid=(num_tiles,),
        in_specs=[
            pl.BlockSpec((D, TB), lambda i: (0, i)),            # x^T: streamed
            pl.BlockSpec((H, D), lambda i: (0, 0)),             # w1^T: resident
            pl.BlockSpec((H, 1), lambda i: (0, 0)),             # b1
            pl.BlockSpec((H2, H), lambda i: (0, 0)),            # w2^T (BN1 folded)
            pl.BlockSpec((H2, 1), lambda i: (0, 0)),            # b2
            pl.BlockSpec((1, H2), lambda i: (0, 0)),            # w3^T (BN2 folded)
            pl.BlockSpec(memory_space=pltpu.MemorySpace.SMEM),  # b3 scalar
        ],
        out_specs=pl.BlockSpec((1, TB), lambda i: (0, i)),      # lane-dense row
    )

    out = pl.pallas_call(
        _mlp_kernel,
        out_shape=jax.ShapeDtypeStruct((1, B_pad), jnp.float32),
        grid_spec=grid_spec,
        compiler_params=pltpu.CompilerParams(
            dimension_semantics=("parallel",),
            vmem_limit_bytes=32 * 1024 * 1024,   # safe under v7x's 64 MiB VMEM
        ),
    )(xT, w1t, b1, w2t, b2, w3t, b3)

    # (1, B_pad) -> (B, 1); drop lane padding.
    return out[:, :B].T


def _reference_forward(params, x):
    """Plain-JAX reference mirroring the kernel math
    (f32 layer 1; bf16 operands + f32 accumulation for layers 2/3)."""
    w1t, b1, w2t, b2, w3t, b3 = _fold_params(params)
    h = jnp.dot(x, w1t.T, preferred_element_type=jnp.float32) + b1.T
    h = jnp.maximum(h, 0.0)
    h = jnp.dot(h.astype(jnp.bfloat16), w2t.T,
                preferred_element_type=jnp.float32) + b2.T
    h = jnp.maximum(h, 0.0)
    y = jnp.dot(h.astype(jnp.bfloat16), w3t.T,
                preferred_element_type=jnp.float32) + b3
    return y


if __name__ == "__main__":
    key = jax.random.PRNGKey(0)
    k_param, k_x1, k_x2 = jax.random.split(key, 3)

    params = init_params(k_param)

    # Small demo batch (single tile).
    B = 8
    x = jax.random.normal(k_x1, (B, INPUT_DIM), jnp.float32)
    out = jax.block_until_ready(street_light_carbon_forward(params, x))
    ref = _reference_forward(params, x)
    assert out.shape == (B, 1), out.shape
    assert jnp.allclose(out, ref, atol=1e-3, rtol=1e-3), "mismatch vs reference (B=8)"

    # Medium batch: exercises >=2 grid tiles (megacore-shardable path).
    B2 = 300
    x2 = jax.random.normal(k_x2, (B2, INPUT_DIM), jnp.float32)
    out2 = jax.block_until_ready(street_light_carbon_forward(params, x2))
    ref2 = _reference_forward(params, x2)
    assert out2.shape == (B2, 1), out2.shape
    assert jnp.allclose(out2, ref2, atol=1e-3, rtol=1e-3), "mismatch vs reference (B=300)"

    print("KERNEL_OK")
</pallas_src>

<mosaic_0001>
module attributes {stable_mosaic.version = 11 : i64} {
  func.func @_mlp_kernel(%arg0: i32, %arg1: memref<10x128xf32, #tpu.memory_space<vmem>>, %arg2: memref<96x10xf32, #tpu.memory_space<vmem>>, %arg3: memref<96x1xf32, #tpu.memory_space<vmem>>, %arg4: memref<48x96xbf16, #tpu.memory_space<vmem>>, %arg5: memref<48x1xf32, #tpu.memory_space<vmem>>, %arg6: memref<1x48xbf16, #tpu.memory_space<vmem>>, %arg7: memref<1xf32, #tpu.memory_space<smem>>, %arg8: memref<1x128xf32, #tpu.memory_space<vmem>>) attributes {dimension_semantics = [#tpu.dimension_semantics<parallel>], iteration_bounds = array<i64: 1>, scalar_prefetch = 0 : i64, scratch_operands = 0 : i64, tpu.core_type = #tpu.core_type<tc>, window_params = [{transform_indices = @transform_0, window_bounds = array<i64: 10, 128>}, {pipeline_mode = #tpu.pipeline_mode<synchronous>, transform_indices = @transform_1, window_bounds = array<i64: 96, 10>}, {pipeline_mode = #tpu.pipeline_mode<synchronous>, transform_indices = @transform_2, window_bounds = array<i64: 96, 1>}, {pipeline_mode = #tpu.pipeline_mode<synchronous>, transform_indices = @transform_3, window_bounds = array<i64: 48, 96>}, {pipeline_mode = #tpu.pipeline_mode<synchronous>, transform_indices = @transform_4, window_bounds = array<i64: 48, 1>}, {pipeline_mode = #tpu.pipeline_mode<synchronous>, transform_indices = @transform_5, window_bounds = array<i64: 1, 48>}, {transform_indices = @transform_6, window_bounds = array<i64: 1>}, {transform_indices = @transform_7, window_bounds = array<i64: 1, 128>}]} {
    %c0 = arith.constant 0 : index
    %c0_0 = arith.constant 0 : index
    %0 = vector.load %arg1[%c0, %c0_0] : memref<10x128xf32, #tpu.memory_space<vmem>>, vector<10x128xf32>
    %c0_1 = arith.constant 0 : index
    %c0_2 = arith.constant 0 : index
    %1 = vector.load %arg2[%c0_1, %c0_2] : memref<96x10xf32, #tpu.memory_space<vmem>>, vector<96x10xf32>
    %cst = arith.constant dense<0.000000e+00> : vector<96x128xf32>
    %2 = tpu.matmul %1, %0, %cst {dimension_numbers = #tpu.dot_dimension_numbers<[1], [0], [0], [1], [0, 0, 1, 1], [], []>} : vector<96x10xf32>, vector<10x128xf32>, vector<96x128xf32> -> vector<96x128xf32>
    %c0_3 = arith.constant 0 : index
    %c0_4 = arith.constant 0 : index
    %3 = vector.load %arg3[%c0_3, %c0_4] : memref<96x1xf32, #tpu.memory_space<vmem>>, vector<96x1xf32>
    %4 = vector.broadcast %3 : vector<96x1xf32> to vector<96x128xf32>
    %5 = arith.addf %2, %4 : vector<96x128xf32>
    %cst_5 = arith.constant 0.000000e+00 : f32
    %6 = vector.broadcast %cst_5 : f32 to vector<96x128xf32>
    %7 = arith.maximumf %5, %6 : vector<96x128xf32>
    %c0_6 = arith.constant 0 : index
    %c0_7 = arith.constant 0 : index
    %8 = vector.load %arg4[%c0_6, %c0_7] : memref<48x96xbf16, #tpu.memory_space<vmem>>, vector<48x96xbf16>
    %9 = arith.truncf %7 : vector<96x128xf32> to vector<96x128xbf16>
    %cst_8 = arith.constant dense<0.000000e+00> : vector<48x128xf32>
    %10 = tpu.matmul %8, %9, %cst_8 {dimension_numbers = #tpu.dot_dimension_numbers<[1], [0], [0], [1], [0, 0, 1, 1], [], []>} : vector<48x96xbf16>, vector<96x128xbf16>, vector<48x128xf32> -> vector<48x128xf32>
    %c0_9 = arith.constant 0 : index
    %c0_10 = arith.constant 0 : index
    %11 = vector.load %arg5[%c0_9, %c0_10] : memref<48x1xf32, #tpu.memory_space<vmem>>, vector<48x1xf32>
    %12 = vector.broadcast %11 : vector<48x1xf32> to vector<48x128xf32>
    %13 = arith.addf %10, %12 : vector<48x128xf32>
    %cst_11 = arith.constant 0.000000e+00 : f32
    %14 = vector.broadcast %cst_11 : f32 to vector<48x128xf32>
    %15 = arith.maximumf %13, %14 : vector<48x128xf32>
    %c0_12 = arith.constant 0 : index
    %c0_13 = arith.constant 0 : index
    %16 = vector.load %arg6[%c0_12, %c0_13] : memref<1x48xbf16, #tpu.memory_space<vmem>>, vector<1x48xbf16>
    %17 = arith.truncf %15 : vector<48x128xf32> to vector<48x128xbf16>
    %cst_14 = arith.constant dense<0.000000e+00> : vector<1x128xf32>
    %18 = tpu.matmul %16, %17, %cst_14 {dimension_numbers = #tpu.dot_dimension_numbers<[1], [0], [0], [1], [0, 0, 1, 1], [], []>} : vector<1x48xbf16>, vector<48x128xbf16>, vector<1x128xf32> -> vector<1x128xf32>
    %c0_15 = arith.constant 0 : index
    %19 = memref.load %arg7[%c0_15] : memref<1xf32, #tpu.memory_space<smem>>
    %20 = vector.broadcast %19 : f32 to vector<1x128xf32>
    %21 = arith.addf %18, %20 : vector<1x128xf32>
    %c0_16 = arith.constant 0 : index
    %c0_17 = arith.constant 0 : index
    %22 = vector.load %arg8[%c0_16, %c0_17] : memref<1x128xf32, #tpu.memory_space<vmem>>, vector<1x128xf32>
    tpu.vector_store %arg8[%c0_16, %c0_17], %21 {strides = array<i32>} : memref<1x128xf32, #tpu.memory_space<vmem>>, vector<1x128xf32>,
    return
  }
  func.func @transform_0(%arg0: i32) -> (i32, i32) {
    %c0_i32 = arith.constant 0 : i32
    %c0_i32_0 = arith.constant 0 : i32
    return %c0_i32, %arg0 : i32, i32
  }
  func.func @transform_1(%arg0: i32) -> (i32, i32) {
    %c0_i32 = arith.constant 0 : i32
    %c0_i32_0 = arith.constant 0 : i32
    %c0_i32_1 = arith.constant 0 : i32
    return %c0_i32, %c0_i32_0 : i32, i32
  }
  func.func @transform_2(%arg0: i32) -> (i32, i32) {
    %c0_i32 = arith.constant 0 : i32
    %c0_i32_0 = arith.constant 0 : i32
    %c0_i32_1 = arith.constant 0 : i32
    return %c0_i32, %c0_i32_0 : i32, i32
  }
  func.func @transform_3(%arg0: i32) -> (i32, i32) {
    %c0_i32 = arith.constant 0 : i32
    %c0_i32_0 = arith.constant 0 : i32
    %c0_i32_1 = arith.constant 0 : i32
    return %c0_i32, %c0_i32_0 : i32, i32
  }
  func.func @transform_4(%arg0: i32) -> (i32, i32) {
    %c0_i32 = arith.constant 0 : i32
    %c0_i32_0 = arith.constant 0 : i32
    %c0_i32_1 = arith.constant 0 : i32
    return %c0_i32, %c0_i32_0 : i32, i32
  }
  func.func @transform_5(%arg0: i32) -> (i32, i32) {
    %c0_i32 = arith.constant 0 : i32
    %c0_i32_0 = arith.constant 0 : i32
    %c0_i32_1 = arith.constant 0 : i32
    return %c0_i32, %c0_i32_0 : i32, i32
  }
  func.func @transform_6(%arg0: i32) -> i32 {
    %c0_i32 = arith.constant 0 : i32
    %c0_i32_0 = arith.constant 0 : i32
    return %c0_i32 : i32
  }
  func.func @transform_7(%arg0: i32) -> (i32, i32) {
    %c0_i32 = arith.constant 0 : i32
    %c0_i32_0 = arith.constant 0 : i32
    return %c0_i32, %arg0 : i32, i32
  }
}

</mosaic_0001>

<bundles_post_ra>
// kernel: tpu_custom_call.1
= control target key start
LH: loop header
LB: loop body
LE: loop exit
PB: predicated region body
PF: predicated region fallthrough
CT: control target
= control target key end

     0   :  { %vm152_vm0 = vcmask 1041408   ;;  %vm115_vm1 = vcmask 80896   ;;  %v628_v4 = vmov 0   ;;  %s815_s0 = inlined_call_operand.vmem [shape: f32[10,128], index: 0, kind: input, shape index: {}]   ;;  %s816_s1 = inlined_call_operand.vmem [shape: f32[96,10], index: 1, kind: input, shape index: {}]   ;;  %s817_s2 = inlined_call_operand.vmem [shape: f32[96,1], index: 2, kind: input, shape index: {}]   ;;  %s818_s3 = inlined_call_operand.vmem [shape: bf16[48,96], index: 3, kind: input, shape index: {}]   ;;  %s819_s4 = inlined_call_operand.vmem [shape: f32[48,1], index: 4, kind: input, shape index: {}]   ;;  %s820_s5 = inlined_call_operand.vmem [shape: bf16[1,48], index: 5, kind: input, shape index: {}]   ;;  %s821_s6 = inlined_call_operand.<no memory space> [shape: f32[1], index: 6, kind: input, shape index: {}]   ;;  %s822_s7 = inlined_call_operand.hbm [shape: f32[1,128], index: 7, kind: output, shape index: {}]  }
   0x1   :  { %v30_v0 = vld [vmem:[%s815_s0 + $0x8] sm:$0x3]  ;;  %v29_v1 = vld [vmem:[%s815_s0] sm:$0xff]  ;;  %602 = vset.pattern.permute.xlu1 %v628_v4  ;;  %v33_v5 = vld [vmem:[%s816_s1 + $0x10] sm:$0xff]  ;;  %601 = vset.pattern.permute.xlu0 %v628_v4 }
   0x2   :  { %v31_v2 = vld [vmem:[%s816_s1] sm:$0xff]  ;;  %541 = vmatprep.subr.msk.mxu0 %vm152_vm0, %v30_v0  ;;  %v32_v3 = vld [vmem:[%s816_s1 + $0x8] sm:$0xff]  ;;  %v53_v7 = vld [vmem:[%s817_s2 + $0x50] sm:$0xff] }
   0x3   :  { %545 = vmatprep.mubr.msk.f32.mxu0 %vm115_vm1, %v31_v2  ;;  %542 = vmatpush3.msk.msra.mxu0 %vm152_vm0, %v30_v0  ;;  %v51_v6 = vld [vmem:[%s817_s2 + $0x40] sm:$0xff]  ;;  %v34_v8 = vld [vmem:[%s816_s1 + $0x18] sm:$0xff]  ;;  %v52_v9 = vld [vmem:[%s817_s2 + $0x48] sm:$0xff] }
   0x4   :  { %543 = vmatprep.subr.mxu0 %v29_v1  ;;  %97 = vperm.xlu1 %602, %v51_v6   ;;  %v35_v10 = vld [vmem:[%s816_s1 + $0x20] sm:$0xff]  ;;  %v54_v11 = vld [vmem:[%s817_s2 + $0x58] sm:$0xff]  ;;  %v36_v12 = vld [vmem:[%s816_s1 + $0x28] sm:$0xff] }
   0x5   :  { %544 = vmatpush3.msra.mxu0 %v29_v1  ;;  %107 = vperm.xlu0 %601, %v53_v7   ;;  %v37_v13 = vld [vmem:[%s816_s1 + $0x30] sm:$0xff]  ;;  %v50_v14 = vld [vmem:[%s817_s2 + $0x38] sm:$0xff] }
   0x6   :  { %546 = vmatmul.mubr.msk.f32.vlgmr.msra.gmra.mxu0 %vm115_vm1, %v32_v3  ;;  %v49_v15 = vld [vmem:[%s817_s2 + $0x30] sm:$0xff] }
   0x7   :  { %548 = vmatprep.mubr.msk.f32.mxu0 %vm115_vm1, %v33_v5 }
   0x8   :  { %102 = vperm.xlu1 %602, %v52_v9  }
   0x9   :  { %112 = vperm.xlu0 %601, %v54_v11  }
   0xa   :  { %549 = vmatmul.mubr.msk.f32.gmra.mxu0 %vm115_vm1, %v34_v8 }
   0xb   :  { %551 = vmatprep.mubr.msk.f32.mxu0 %vm115_vm1, %v35_v10 }
   0xc   :  { %13 = vsyncpa [#allocation4], 0  ;;  %92 = vperm.xlu1 %602, %v50_v14   ;;  %v38_v16 = vld [vmem:[%s816_s1 + $0x38] sm:$0xff]  ;;  %v48_v17 = vld [vmem:[%s817_s2 + $0x28] sm:$0xff]  ;;  %v629_v33 = vmov 0.0   ;;  %vm630_vm2 = vmmov 0  }
   0xd   :  { %87 = vperm.xlu0 %601, %v49_v15   ;;  %v39_v18 = vld [vmem:[%s816_s1 + $0x40] sm:$0xff]  ;;  %v40_v20 = vld [vmem:[%s816_s1 + $0x48] sm:$0xff]  ;;  %v46_v21 = vld [vmem:[%s817_s2 + $0x18] sm:$0xff]  ;;  %563 = vmatprep.subr.bf16.mxu1 %v629_v33  ;;  %vm356_vm3 = vcmask 785408   ;;  %vm435_vm4 = vcmask 392192   ;;  %s631_s22 = smov [#allocation3]  }
   0xe   :  { %552 = vmatmul.mubr.msk.f32.gmra.mxu0 %vm115_vm1, %v36_v12  ;;  %v47_v19 = vld [vmem:[%s817_s2 + $0x20] sm:$0xff]  ;;  %v41_v22 = vld [vmem:[%s816_s1 + $0x50] sm:$0xff]  ;;  %v42_v24 = vld [vmem:[%s816_s1 + $0x58] sm:$0xff]  ;;  %587 = vmatprep.subr.bf16.mxu0 %v629_v33  ;;  %s486_s23 = sshll.u32 %s631_s22, 4  ;;  %s487_s23 = int_to_ptr.vmem [resolvable:$true] %s486_s23 }
   0xf   :  { %554 = vmatprep.mubr.msk.f32.mxu0 %vm115_vm1, %v37_v13  ;;  %v45_v23 = vld [vmem:[%s817_s2 + $0x10] sm:$0xff]  ;;  %v44_v25 = vld [vmem:[%s817_s2 + $0x8] sm:$0xff]  ;;  %v43_v26 = vld [vmem:[%s817_s2] sm:$0xff]  ;;  %575 = vmatprep.mubr.msk.bf16.mxu1 %vm630_vm2, %v629_v33  ;;  %s606_s24 = scalar_lea.vmem %s487_s23, 16  ;;  %s610_s25 = scalar_lea.vmem %s487_s23, 32 }
  0x10   :  { %82 = vperm.xlu1 %602, %v48_v17   ;;  %v310_v27 = vld [vmem:[%s819_s4 + $0x28] sm:$0xff]  ;;  %v309_v28 = vld [vmem:[%s819_s4 + $0x20] sm:$0xff]  ;;  %v308_v29 = vld [vmem:[%s819_s4 + $0x18] sm:$0xff]  ;;  %p607_p0 = scmp.ne.s32.totalorder %s487_s23, %s606_s24  ;;  %p611_p1 = scmp.lt.s32.totalorder %s487_s23, %s487_s23 }
  0x11   :  { %77 = vperm.xlu0 %601, %v47_v19   ;;  %v307_v30 = vld [vmem:[%s819_s4 + $0x10] sm:$0xff]  ;;  %v306_v31 = vld [vmem:[%s819_s4 + $0x8] sm:$0xff]  ;;  %v305_v32 = vld [vmem:[%s819_s4] sm:$0xff]  ;;  %p612_p2 = scmp.lt.s32.totalorder %s610_s25, %s606_s24 }
  0x12   :  { %555 = vmatmul.mubr.msk.f32.gmra.mxu0 %vm115_vm1, %v38_v16 }
  0x13   :  { %557 = vmatprep.mubr.msk.f32.mxu0 %vm115_vm1, %v39_v18  ;;  %p613_p3 = por %p612_p2, %p611_p1 }
  0x14   :  { %72 = vperm.xlu1 %602, %v46_v21  }
  0x15   :  { %67 = vperm.xlu0 %601, %v45_v23   ;;  %p614_p4 = pnand %p613_p3, %p607_p0 }
  0x16   :  { %558 = vmatmul.mubr.msk.f32.gmra.mxu0 %vm115_vm1, %v40_v20 }
  0x17   :  { %560 = vmatprep.mubr.msk.f32.mxu0 %vm115_vm1, %v41_v22 }
  0x18   :  { %62 = vperm.xlu1 %602, %v44_v25   ;;  %v604_v25 = vld [vmem:[%s818_s3 + $0x8] sm:$0xff]  }
  0x19   :  { %57 = vperm.xlu0 %601, %v43_v26   ;;  %v605_v26 = vld [vmem:[%s818_s3 + $0x10] sm:$0xff]  }
  0x1a   :  { %561 = vmatmul.mubr.msk.f32.gmra.mxu0 %vm115_vm1, %v42_v24  ;;  %v603_v24 = vld [vmem:[%s818_s3] sm:$0xff]  }
  0x1b   :  { %593 = vmatprep.mubr.msk.bf16.mxu0 %vm630_vm2, %v629_v33 }
  0x1c   :  { %338 = vperm.xlu1 %602, %v310_v27  }
  0x1d   :  { %333 = vperm.xlu0 %601, %v309_v28  }
  0x20   :  { %328 = vperm.xlu1 %602, %v308_v29  }
  0x21   :  { %323 = vperm.xlu0 %601, %v307_v30  }
  0x24   :  { %318 = vperm.xlu1 %602, %v306_v31  }
  0x25   :  { %313 = vperm.xlu0 %601, %v305_v32  }
  0x7f   :  { %v98_v39 = vpop.permute.xlu1 %97 }
  0x80   :  { %v108_v37 = vpop.permute.xlu0 %107 }
  0x83   :  { %v103_v44 = vpop.permute.xlu1 %102 }
  0x84   :  { %v113_v42 = vpop.permute.xlu0 %112 }
  0x87   :  { %v93_v49 = vpop.permute.xlu1 %92 }
  0x88   :  { %v88_v47 = vpop.permute.xlu0 %87 }
  0x8b   :  { %v83_v59 = vpop.permute.xlu1 %82 }
  0x8c   :  { %v78_v55 = vpop.permute.xlu0 %77 }
  0x8f   :  { %v73_v5 = vpop.permute.xlu1 %72 }
  0x90   :  { %v68_v1 = vpop.permute.xlu0 %67 }
  0x93   :  { %v63_v14 = vpop.permute.xlu1 %62 }
  0x94   :  { %v58_v11 = vpop.permute.xlu0 %57 }
  0xc6   :  { %v547_v34 = vpop.f32.mrf.mxu0 }
  0xc7   :  { %v228_v18 = vadd.f32 %v547_v34, %v63_v14  ;;  %v339_v34 = vpop.permute.xlu1 %338 }
  0xc8   :  { %v222_v35 = vpop.f32.mrf.mxu0 }
  0xc9   :  { %v223_v15 = vadd.f32 %v222_v35, %v58_v11  ;;  %v282_v22 = vmax.f32 %v228_v18, 0.0 }
  0xca   :  { %v550_v36 = vpop.f32.mrf.mxu0 }
  0xcb   :  { %v238_v12 = vadd.f32 %v550_v36, %v73_v5  ;;  %v281_v20 = vmax.f32 %v223_v15, 0.0  ;;  %v334_v36 = vpop.permute.xlu0 %333 }
  0xcc   :  { %v232_v38 = vpop.f32.mrf.mxu0 }
  0xcd   :  { %v233_v8 = vadd.f32 %v232_v38, %v68_v1  ;;  %v284_v19 = vmax.f32 %v238_v12, 0.0  ;;  %v299_v23 = vpack.c.bf16 %v282_v22, %v281_v20 }
  0xce   :  { %v553_v40 = vpop.f32.mrf.mxu0 }
  0xcf   :  { %v248_v6 = vadd.f32 %v553_v40, %v83_v59  ;;  %v283_v16 = vmax.f32 %v233_v8, 0.0 }
  0xd0   :  { %v242_v41 = vpop.f32.mrf.mxu0 }
  0xd1   :  { %v243_v2 = vadd.f32 %v242_v41, %v78_v55  ;;  %v286_v13 = vmax.f32 %v248_v6, 0.0  ;;  %v300_v21 = vpack.c.bf16 %v284_v19, %v283_v16 }
  0xd2   :  { %v556_v43 = vpop.f32.mrf.mxu0 }
  0xd3   :  { %v258_v63 = vadd.f32 %v556_v43, %v93_v49  ;;  %v285_v9 = vmax.f32 %v243_v2, 0.0 }
  0xd4   :  { %v252_v45 = vpop.f32.mrf.mxu0 }
  0xd5   :  { %v253_v60 = vadd.f32 %v252_v45, %v88_v47  ;;  %v288_v7 = vmax.f32 %v258_v63, 0.0  ;;  %v301_v17 = vpack.c.bf16 %v286_v13, %v285_v9 }
  0xd6   :  { %v559_v46 = vpop.f32.mrf.mxu0 }
  0xd7   :  { %v268_v56 = vadd.f32 %v559_v46, %v103_v44  ;;  %v287_v3 = vmax.f32 %v253_v60, 0.0 }
  0xd8   :  { %v262_v48 = vpop.f32.mrf.mxu0 }
  0xd9   :  { %v263_v53 = vadd.f32 %v262_v48, %v98_v39  ;;  %v290_v0 = vmax.f32 %v268_v56, 0.0  ;;  %v302_v10 = vpack.c.bf16 %v288_v7, %v287_v3  ;;  %v329_v39 = vpop.permute.xlu1 %328 }
  0xda   :  { %v562_v50 = vpop.f32.mrf.mxu0 }
  0xdb   :  { %v278_v51 = vadd.f32 %v562_v50, %v113_v42  ;;  %v289_v61 = vmax.f32 %v263_v53, 0.0  ;;  %v324_v42 = vpop.permute.xlu0 %323 }
  0xdc   :  { %v272_v52 = vpop.f32.mrf.mxu0 }
  0xdd   :  { %v273_v54 = vadd.f32 %v272_v52, %v108_v37  ;;  %v292_v57 = vmax.f32 %v278_v51, 0.0  ;;  %v303_v4 = vpack.c.bf16 %v290_v0, %v289_v61  ;;  %v319_v50 = vpop.permute.xlu1 %318  ;;  %v429_v61 = vld [vmem:[%s820_s5] sm:$0x1] }
  0xdf   :  { %v291_v58 = vmax.f32 %v273_v54, 0.0  ;;  %v314_v54 = vpop.permute.xlu0 %313 }
  0xe1   :  { %v304_v62 = vpack.c.bf16 %v292_v57, %v291_v58 }
  0xe3   :  { %564 = vmatpush3.bf16.msra.mxu1 %v304_v62  ;;  %v434_v62 = vstv %s821_s6 }
  0xe4   :  { %565 = vmatprep.subr.bf16.mxu1 %v629_v33 }
  0xe7   :  { %566 = vmatpush3.bf16.msra.mxu1 %v303_v4 }
  0xe8   :  { %567 = vmatprep.subr.bf16.mxu1 %v629_v33 }
  0xeb   :  { %568 = vmatpush3.bf16.msra.mxu1 %v302_v10 }
  0xec   :  { %569 = vmatprep.subr.bf16.mxu1 %v629_v33 }
  0xef   :  { %570 = vmatpush3.bf16.msra.mxu1 %v301_v17 }
  0xf0   :  { %571 = vmatprep.subr.bf16.mxu1 %v629_v33 }
  0xf3   :  { %572 = vmatpush3.bf16.msra.mxu1 %v300_v21 }
  0xf4   :  { %573 = vmatprep.subr.bf16.mxu1 %v629_v33 }
  0xf7   :  { %574 = vmatpush3.bf16.msra.mxu1 %v299_v23 }
  0xfa   :  { %576 = vmatmul.mubr.msk.bf16.vlgmr.msra.gmra.mxu1 %vm356_vm3, %v603_v24 }
  0xfb   :  { %579 = vmatprep.mubr.msk.bf16.mxu1 %vm630_vm2, %v629_v33 }
 0x102   :  { %580 = vmatmul.mubr.msk.bf16.gmra.mxu1 %vm356_vm3, %v604_v25 }
 0x103   :  { %583 = vmatprep.mubr.msk.bf16.mxu1 %vm630_vm2, %v629_v33 }
 0x10a   :  { %584 = vmatmul.mubr.msk.bf16.gmra.mxu1 %vm356_vm3, %v605_v26 }
 0x1ba   :  { %v400_v27 = vpop.f32.mrf.mxu1 }
 0x1bb   :  { %v401_v55 = vadd.f32 %v400_v27, %v314_v54 }
 0x1bc   :  { %v577_v28 = vpop.f32.mrf.mxu1 }
 0x1bd   :  { %v423_v59 = vmax.f32 %v401_v55, 0.0 }
 0x1be   :  { %v403_v29 = vpop.f32.mrf.mxu1 }
 0x1bf   :  { %v404_v51 = vadd.f32 %v403_v29, %v319_v50 }
 0x1c0   :  { %v578_v30 = vpop.f32.mrf.mxu1 }
 0x1c1   :  { %v424_v57 = vmax.f32 %v404_v51, 0.0 }
 0x1c2   :  { %v408_v31 = vpop.f32.mrf.mxu1 }
 0x1c3   :  { %v409_v47 = vadd.f32 %v408_v31, %v324_v42  ;;  %v430_v60 = vpack.c.bf16 %v424_v57, %v423_v59 }
 0x1c4   :  { %v581_v32 = vpop.f32.mrf.mxu1 }
 0x1c5   :  { %v425_v56 = vmax.f32 %v409_v47, 0.0 }
 0x1c6   :  { %v411_v35 = vpop.f32.mrf.mxu1 }
 0x1c7   :  { %v412_v44 = vadd.f32 %v411_v35, %v329_v39 }
 0x1c8   :  { %v582_v37 = vpop.f32.mrf.mxu1 }
 0x1c9   :  { %v426_v52 = vmax.f32 %v412_v44, 0.0 }
 0x1ca   :  { %v416_v38 = vpop.f32.mrf.mxu1 }
 0x1cb   :  { %v417_v41 = vadd.f32 %v416_v38, %v334_v36  ;;  %v431_v58 = vpack.c.bf16 %v426_v52, %v425_v56 }
 0x1cc   :  { %v585_v40 = vpop.f32.mrf.mxu1 }
 0x1cd   :  { %v427_v48 = vmax.f32 %v417_v41, 0.0 }
 0x1ce   :  { %v419_v43 = vpop.f32.mrf.mxu1 }
 0x1cf   :  { %v420_v45 = vadd.f32 %v419_v43, %v339_v34 }
 0x1d0   :  { %v586_v46 = vpop.f32.mrf.mxu1 }
 0x1d1   :  { %v428_v49 = vmax.f32 %v420_v45, 0.0 }
 0x1d3   :  { %v432_v53 = vpack.c.bf16 %v428_v49, %v427_v48 }
 0x1d5   :  { %588 = vmatpush3.bf16.msra.mxu0 %v432_v53 }
 0x1d6   :  { %589 = vmatprep.subr.bf16.mxu0 %v629_v33 }
 0x1d9   :  { %590 = vmatpush3.bf16.msra.mxu0 %v431_v58 }
 0x1da   :  { %591 = vmatprep.subr.bf16.mxu0 %v629_v33 }
 0x1dd   :  { %592 = vmatpush3.bf16.msra.mxu0 %v430_v60 }
 0x1e0   :  { %594 = vmatmul.mubr.msk.bf16.vlgmr.msra.gmra.mxu0 %vm435_vm4, %v429_v61 }
 0x2a0   :  { %v473_v63 = vpop.f32.mrf.mxu0 }
 0x2a1   :  { %v474_v0 = vadd.f32 %v473_v63, %v434_v62 }
 0x2a2   :  { %v595_v1 = vpop.f32.mrf.mxu0 }
 0x2a3   :  { %479 = vst [vmem:[#allocation3] sm:$0x1] %v474_v0 }
 0x2a4   :  { %v476_v33 = vpop.f32.mrf.mxu0 }
 0x2a5   :  { %617 = shalt.err (!%p614_p4)
}
 0x2a6   :  { %489 = dma.vmem_to_hbm [thread:$0]  %s487_s23, 16, %s822_s7, [#allocation4]   ;;  %v596_v2 = vpop.f32.mrf.mxu0 }
 0x2a7   :  { %626 = dma.done.wait [#allocation4], 16  }
 0x2a8   :  { %627 = vsyncadd [#allocation4], 4294967280 }
 0x2a9   :  { %493 = vsyncpa [#allocation4], 1 }

</bundles_post_ra>
